<compile_context>
chip_gen: v5e
topology: v5e:2x2
jax: 0.10.0
libtpu: 0.0.40
codegen_flags: <defaults>
</compile_context>

<pallas_src>
import numpy as np

import jax
import jax.numpy as jnp
from jax import lax
from jax.experimental import pallas as pl
from jax.experimental.pallas import tpu as pltpu


# ---------------------------------------------------------------------------
# Fixed SRM high-pass filter bank (row-major +1 position, -1 at the center).
# ---------------------------------------------------------------------------
def _make_filter_bank():
    filters = []
    for r in range(5):
        for c in range(5):
            if (r, c) == (2, 2):
                continue
            f = np.zeros((5, 5), np.float32)
            f[r, c] = 1.0
            f[2, 2] = -1.0
            filters.append(f)
    return np.stack(filters)          # (24, 5, 5), same order as filter_class_5


_HPF_WEIGHT = _make_filter_bank()[:8]  # first 8 filters (see TODO above)


# ---------------------------------------------------------------------------
# Fused Pallas kernel: 1x1 conv (channel matmul) + BN affine + TLU clamp.
# ---------------------------------------------------------------------------
def _conv1_bn_tlu_kernel(thr_ref, x_ref, w_ref, scale_ref, shift_ref, o_ref):
    t = thr_ref[0]                                                  # SMEM scalar
    y = jnp.dot(x_ref[...], w_ref[...], preferred_element_type=jnp.float32)
    y = y * scale_ref[...] + shift_ref[...]                         # folded BatchNorm
    o_ref[...] = jnp.clip(y, -t, t).astype(o_ref.dtype)             # TLU


_TARGET_BLOCK_BYTES = 4 * 1024 * 1024   # in+out bytes per grid step (v7x-friendly)


def _sublane_multiple(dtype):
    # 8 rows for 32-bit, 16 for bf16, 32 for int8/fp8 (packed sublanes).
    return 8 * max(1, 4 // jnp.dtype(dtype).itemsize)


def conv1_bn_tlu_pallas(x2d, w_t, scale, shift, threshold):
    """clip((x2d @ w_t) * scale + shift, -threshold, +threshold) in one pass.

    x2d:   (M, Cin)   hpf output, pixel-major, channels on the lane dim.
    w_t:   (Cin, Cout) 1x1-conv weight, transposed.
    scale: (Cout,)    gamma / sqrt(var + eps).
    shift: (Cout,)    beta - mean * scale.
    threshold: scalar (Python number or traced value).
    """
    m, cin = x2d.shape
    cout = w_t.shape[1]
    dtype = x2d.dtype
    itemsize = jnp.dtype(dtype).itemsize
    sub = _sublane_multiple(dtype)

    thr = jnp.reshape(jnp.asarray(threshold, jnp.float32), (1,))
    scale2d = scale.astype(jnp.float32).reshape(1, cout)
    shift2d = shift.astype(jnp.float32).reshape(1, cout)

    # Tiny slabs: one fused XLA expression is already at roofline.
    if m < sub:
        y = jnp.dot(x2d, w_t.astype(dtype), preferred_element_type=jnp.float32)
        y = y * scale2d + shift2d
        return jnp.clip(y, -thr[0], thr[0]).astype(dtype)

    # ~4 MiB (in + out) per block; rows a dtype-aware sublane multiple; grid
    # forced even (>= 2) so dimension_semantics=("parallel",) can shard across
    # both v7x TensorCores even for small activations.
    bytes_per_row = (cin + cout) * itemsize
    target_rows = max(sub, (_TARGET_BLOCK_BYTES // bytes_per_row) // sub * sub)
    n_blocks = 2 * pl.cdiv(m, 2 * target_rows)            # even, >= 2
    block_rows = pl.cdiv(m, n_blocks)
    block_rows = pl.cdiv(block_rows, sub) * sub           # round up to sublane mult
    block_rows = max(sub, min(block_rows, (m // sub) * sub))
    grid = (pl.cdiv(m, block_rows),)

    out2d = pl.pallas_call(
        _conv1_bn_tlu_kernel,
        out_shape=jax.ShapeDtypeStruct((m, cout), dtype),
        grid_spec=pltpu.PrefetchScalarGridSpec(
            num_scalar_prefetch=1,                          # threshold -> SMEM
            grid=grid,
            in_specs=[
                pl.BlockSpec((block_rows, cin), lambda i, thr_ref: (i, 0)),
                pl.BlockSpec((cin, cout), lambda i, thr_ref: (0, 0)),
                pl.BlockSpec((1, cout), lambda i, thr_ref: (0, 0)),
                pl.BlockSpec((1, cout), lambda i, thr_ref: (0, 0)),
            ],
            out_specs=pl.BlockSpec((block_rows, cout), lambda i, thr_ref: (i, 0)),
        ),
        compiler_params=pltpu.CompilerParams(
            dimension_semantics=("parallel",),
        ),
        cost_estimate=pl.CostEstimate(
            flops=2 * m * cin * cout + 4 * m * cout,
            transcendentals=0,
            bytes_accessed=(m * cin + m * cout) * itemsize,
        ),
    )(thr, x2d, w_t.astype(dtype), scale2d, shift2d)
    return out2d


# ---------------------------------------------------------------------------
# Full module forward (hpf in XLA; conv1 + BN + TLU fused in Pallas).
# ---------------------------------------------------------------------------
def allconnect_filter_bn_5_forward(image_nchw, conv1_weight, gamma, beta,
                                   threshold=1.0, eps=1e-5):
    """Forward of AllConnectFilter_bn_5 (training-mode BatchNorm, PyTorch default).

    image_nchw:   (B, 1, H, W)
    conv1_weight: (Cout, 8) or (Cout, 8, 1, 1)
    gamma, beta:  (Cout,)
    Returns (B, Cout, H-4, W-4), NCHW like the PyTorch module.
    """
    dtype = image_nchw.dtype
    if conv1_weight.ndim == 4:
        conv1_weight = conv1_weight.reshape(conv1_weight.shape[0], -1)
    b = image_nchw.shape[0]

    # ---- hpf: fixed 5x5 SRM conv (NHWC so channels land on the lane dim) ----
    hpf_w = jnp.asarray(_HPF_WEIGHT.transpose(1, 2, 0)[:, :, None, :], dtype)  # (5,5,1,8)
    img_nhwc = jnp.transpose(image_nchw, (0, 2, 3, 1))
    hpf_out = lax.conv_general_dilated(
        img_nhwc, hpf_w, window_strides=(1, 1), padding="VALID",
        dimension_numbers=("NHWC", "HWIO", "NHWC"))          # (B, H-4, W-4, 8)
    _, ho, wo, cin = hpf_out.shape
    m = b * ho * wo
    x2d = hpf_out.reshape(m, cin)

    # ---- fold training-mode BatchNorm of the conv1 output into (scale, shift).
    # conv1 is linear, so the batch mean / biased batch variance of its output
    # follow exactly from the 8-channel mean and 8x8 covariance of the hpf
    # output — the Cout-channel activation never has to be materialized for stats.
    w_t = conv1_weight.astype(jnp.float32).T                 # (8, Cout)
    xf = x2d.astype(jnp.float32)
    mu_x = jnp.mean(xf, axis=0)                              # (8,)
    xc = xf - mu_x
    cov = (xc.T @ xc) / m                                    # (8, 8), biased
    mu_y = mu_x @ w_t                                        # (Cout,)
    var_y = jnp.einsum("kc,kl,lc->c", w_t, cov, w_t)         # (Cout,)
    inv_std = lax.rsqrt(var_y + eps)
    scale = gamma.astype(jnp.float32) * inv_std
    shift = beta.astype(jnp.float32) - mu_y * scale

    # ---- fused conv1 (1x1) + BN affine + TLU clamp: ONE Pallas pass ----
    out2d = conv1_bn_tlu_pallas(x2d, w_t.astype(dtype), scale, shift, threshold)

    out = out2d.reshape(b, ho, wo, -1)
    return jnp.transpose(out, (0, 3, 1, 2))                  # NCHW, like PyTorch


# ---------------------------------------------------------------------------
# Pure-JAX reference (mirrors the PyTorch module forward, training-mode BN).
# ---------------------------------------------------------------------------
def _reference_forward(image_nchw, conv1_weight, gamma, beta, threshold=1.0, eps=1e-5):
    hpf_w = jnp.asarray(_HPF_WEIGHT[:, None, :, :], image_nchw.dtype)  # (8,1,5,5) OIHW
    hpf_out = lax.conv_general_dilated(
        image_nchw, hpf_w, window_strides=(1, 1), padding="VALID",
        dimension_numbers=("NCHW", "OIHW", "NCHW"))
    y = jnp.einsum("bkhw,ck->bchw", hpf_out, conv1_weight)
    mu = jnp.mean(y, axis=(0, 2, 3), keepdims=True)
    var = jnp.mean((y - mu) ** 2, axis=(0, 2, 3), keepdims=True)
    ybn = (y - mu) * lax.rsqrt(var + eps) * gamma.reshape(1, -1, 1, 1) \
          + beta.reshape(1, -1, 1, 1)
    return jnp.clip(ybn, -threshold, threshold)


if __name__ == "__main__":
    key = jax.random.PRNGKey(0)
    k_img, k_w, k_g, k_b, k_img2, k_w2, k_g2, k_b2 = jax.random.split(key, 8)

    fwd = jax.jit(allconnect_filter_bn_5_forward)

    # --- case 1: module defaults (outchannel=64, threshold=1), small 16x16 input.
    threshold = 1.0
    outchannel = 64
    image = jax.random.normal(k_img, (2, 1, 16, 16), dtype=jnp.float32)
    conv1_w = 0.3 * jax.random.normal(k_w, (outchannel, 8), dtype=jnp.float32)
    gamma = 1.0 + 0.1 * jax.random.normal(k_g, (outchannel,), dtype=jnp.float32)
    beta = 0.1 * jax.random.normal(k_b, (outchannel,), dtype=jnp.float32)

    out = jax.block_until_ready(fwd(image, conv1_w, gamma, beta, threshold))
    ref = _reference_forward(image, conv1_w, gamma, beta, threshold)
    assert out.shape == (2, outchannel, 12, 12)
    assert out.dtype == image.dtype
    assert jnp.allclose(out, ref, atol=1e-3, rtol=1e-3), "fused conv1+BN+TLU mismatch (64ch)"

    # --- case 2: different channel count / spatial size (still two full blocks).
    outchannel2 = 32
    image2 = jax.random.normal(k_img2, (2, 1, 36, 36), dtype=jnp.float32)
    conv1_w2 = 0.3 * jax.random.normal(k_w2, (outchannel2, 8), dtype=jnp.float32)
    gamma2 = 1.0 + 0.1 * jax.random.normal(k_g2, (outchannel2,), dtype=jnp.float32)
    beta2 = 0.1 * jax.random.normal(k_b2, (outchannel2,), dtype=jnp.float32)

    out2 = jax.block_until_ready(fwd(image2, conv1_w2, gamma2, beta2, threshold))
    ref2 = _reference_forward(image2, conv1_w2, gamma2, beta2, threshold)
    assert out2.shape == (2, outchannel2, 32, 32)
    assert jnp.allclose(out2, ref2, atol=1e-3, rtol=1e-3), "fused conv1+BN+TLU mismatch (32ch)"

    print("KERNEL_OK")
</pallas_src>

<mosaic_0001>
module attributes {stable_mosaic.version = 11 : i64} {
  func.func @_conv1_bn_tlu_kernel(%arg0: i32, %arg1: memref<1xf32, #tpu.memory_space<smem>>, %arg2: memref<144x8xf32, #tpu.memory_space<vmem>>, %arg3: memref<8x64xf32, #tpu.memory_space<vmem>>, %arg4: memref<1x64xf32, #tpu.memory_space<vmem>>, %arg5: memref<1x64xf32, #tpu.memory_space<vmem>>, %arg6: memref<144x64xf32, #tpu.memory_space<vmem>>) attributes {dimension_semantics = [#tpu.dimension_semantics<parallel>], iteration_bounds = array<i64: 2>, scalar_prefetch = 1 : i64, scratch_operands = 0 : i64, tpu.core_type = #tpu.core_type<tc>, window_params = [{transform_indices = @transform_0, window_bounds = array<i64: 144, 8>}, {pipeline_mode = #tpu.pipeline_mode<synchronous>, transform_indices = @transform_1, window_bounds = array<i64: 8, 64>}, {pipeline_mode = #tpu.pipeline_mode<synchronous>, transform_indices = @transform_2, window_bounds = array<i64: 1, 64>}, {pipeline_mode = #tpu.pipeline_mode<synchronous>, transform_indices = @transform_3, window_bounds = array<i64: 1, 64>}, {transform_indices = @transform_4, window_bounds = array<i64: 144, 64>}]} {
    %c0 = arith.constant 0 : index
    %0 = memref.load %arg1[%c0] : memref<1xf32, #tpu.memory_space<smem>>
    %c0_0 = arith.constant 0 : index
    %c0_1 = arith.constant 0 : index
    %1 = vector.load %arg2[%c0_0, %c0_1] : memref<144x8xf32, #tpu.memory_space<vmem>>, vector<144x8xf32>
    %c0_2 = arith.constant 0 : index
    %c0_3 = arith.constant 0 : index
    %2 = vector.load %arg3[%c0_2, %c0_3] : memref<8x64xf32, #tpu.memory_space<vmem>>, vector<8x64xf32>
    %cst = arith.constant dense<0.000000e+00> : vector<144x64xf32>
    %3 = tpu.matmul %1, %2, %cst {dimension_numbers = #tpu.dot_dimension_numbers<[1], [0], [0], [1], [0, 0, 1, 1], [], []>} : vector<144x8xf32>, vector<8x64xf32>, vector<144x64xf32> -> vector<144x64xf32>
    %c0_4 = arith.constant 0 : index
    %c0_5 = arith.constant 0 : index
    %4 = vector.load %arg4[%c0_4, %c0_5] : memref<1x64xf32, #tpu.memory_space<vmem>>, vector<1x64xf32>
    %5 = vector.broadcast %4 : vector<1x64xf32> to vector<144x64xf32>
    %6 = arith.mulf %3, %5 : vector<144x64xf32>
    %c0_6 = arith.constant 0 : index
    %c0_7 = arith.constant 0 : index
    %7 = vector.load %arg5[%c0_6, %c0_7] : memref<1x64xf32, #tpu.memory_space<vmem>>, vector<1x64xf32>
    %8 = vector.broadcast %7 : vector<1x64xf32> to vector<144x64xf32>
    %9 = arith.addf %6, %8 : vector<144x64xf32>
    %cst_8 = arith.constant 0.000000e+00 : f32
    %10 = arith.subf %cst_8, %0 : f32
    %11 = vector.broadcast %10 : f32 to vector<144x64xf32>
    %12 = arith.maximumf %11, %9 : vector<144x64xf32>
    %13 = vector.broadcast %0 : f32 to vector<144x64xf32>
    %14 = arith.minimumf %13, %12 : vector<144x64xf32>
    %c0_9 = arith.constant 0 : index
    %c0_10 = arith.constant 0 : index
    %15 = vector.load %arg6[%c0_9, %c0_10] : memref<144x64xf32, #tpu.memory_space<vmem>>, vector<144x64xf32>
    tpu.vector_store %arg6[%c0_9, %c0_10], %14 {strides = array<i32>} : memref<144x64xf32, #tpu.memory_space<vmem>>, vector<144x64xf32>,
    return
  }
  func.func @transform_0(%arg0: i32, %arg1: memref<1xf32, #tpu.memory_space<smem>>) -> (i32, i32) {
    %c0_i32 = arith.constant 0 : i32
    %c0_i32_0 = arith.constant 0 : i32
    return %arg0, %c0_i32 : i32, i32
  }
  func.func @transform_1(%arg0: i32, %arg1: memref<1xf32, #tpu.memory_space<smem>>) -> (i32, i32) {
    %c0_i32 = arith.constant 0 : i32
    %c0_i32_0 = arith.constant 0 : i32
    %c0_i32_1 = arith.constant 0 : i32
    return %c0_i32, %c0_i32_0 : i32, i32
  }
  func.func @transform_2(%arg0: i32, %arg1: memref<1xf32, #tpu.memory_space<smem>>) -> (i32, i32) {
    %c0_i32 = arith.constant 0 : i32
    %c0_i32_0 = arith.constant 0 : i32
    %c0_i32_1 = arith.constant 0 : i32
    return %c0_i32, %c0_i32_0 : i32, i32
  }
  func.func @transform_3(%arg0: i32, %arg1: memref<1xf32, #tpu.memory_space<smem>>) -> (i32, i32) {
    %c0_i32 = arith.constant 0 : i32
    %c0_i32_0 = arith.constant 0 : i32
    %c0_i32_1 = arith.constant 0 : i32
    return %c0_i32, %c0_i32_0 : i32, i32
  }
  func.func @transform_4(%arg0: i32, %arg1: memref<1xf32, #tpu.memory_space<smem>>) -> (i32, i32) {
    %c0_i32 = arith.constant 0 : i32
    %c0_i32_0 = arith.constant 0 : i32
    return %arg0, %c0_i32 : i32, i32
  }
}

</mosaic_0001>

<bundles_post_ra>
// kernel: allconnect_filter_bn_5_forward.1
= control target key start
LH: loop header
LB: loop body
LE: loop exit
PB: predicated region body
PF: predicated region fallthrough
CT: control target
= control target key end

     0   :  { %s588_s20 = smov 0   ;;  %s777_s0 = inlined_call_operand.<no memory space> [shape: f32[1], index: 0, kind: input, shape index: {}]   ;;  %s778_s1 = inlined_call_operand.vmem [shape: f32[288,8], index: 1, kind: input, shape index: {}]   ;;  %s779_s2 = inlined_call_operand.vmem [shape: f32[8,64], index: 2, kind: input, shape index: {}]   ;;  %s780_s3 = inlined_call_operand.vmem [shape: f32[1,64], index: 3, kind: input, shape index: {}]   ;;  %s781_s4 = inlined_call_operand.vmem [shape: f32[1,64], index: 4, kind: input, shape index: {}]   ;;  %s782_s5 = inlined_call_operand.vmem [shape: f32[288,64], index: 5, kind: output, shape index: {}]  }
   0x1   :  { %10 = sst [smem:[#allocation3]] %s777_s0 }
   0x2 LB: > { %s507_s21 = sadd.s32 4294967295, %s553_s20   ;;  %p511_p0 = scmp.ge.s32.totalorder %s553_s20, 1  ;;  %s553_s20 = sphi %s588_s20, %s16_s20  }
   0x3   : > { %p165_p1 = scmp.lt.s32.totalorder %s553_s20, 3 }
   0x5   : > { %p166_p2 = pnand %p511_p0, %p165_p1 }
   0x6   : > { %s191_s0 = smul.u32 (!%p166_p2), 18, %s507_s21  ;;  %s203_s28 = sld [smem:[#allocation3]] (!%p166_p2) }
   0x7   : > { %169 = sbr.rel (%p166_p2) target bundleno = 189 (0xbd), region = 36 }
   0x8   : > { %p192_p3 = scmp.lt.s32.totalorder (!%p166_p2), %s191_s0, 35 }
   0xc   : > { %v222_v0 = vld [vmem:[%s779_s2] sm:$0xff]  ;;  %s784_s0 = smov (!%p192_p3, %s191_s0), 35  ;;  %vm223_vm0 = vcmask 64512   ;;  %s393_s6 = ssub.f32 0.0, %s203_s28  ;;  %v660_v27 = vstv %s203_s28  ;;  %vm432_vm1 = vcmask 523264  }
   0xd   : > { %535 = vmatpush.msra.mxu2 %v222_v0  ;;  %293 = vmatpush.msra.mxu0 %v222_v0  ;;  %s512_s24 = sshll.u32 %s784_s0, 3  ;;  %v648_v19 = vld [vmem:[%s780_s3] ss:$0 sm:$0xff] }
   0xe   : > { %534 = vmatpush.msra.mxu1 %v222_v0  ;;  %536 = vmatpush.msra.mxu3 %v222_v0  ;;  %s607_s27 = scalar_lea.vmem %s778_s1, %s512_s24  ;;  %v653_v20 = vld [vmem:[%s781_s4] ss:$0 sm:$0xff]  ;;  %v656_v24 = vstv %s393_s6  ;;  %s669_s11 = scalar_lea.vmem %s782_s5, %s512_s24 }
   0xf   : > { %v214_v1 = vld [vmem:[%s607_s27 + $0x50] sm:$0xff]  ;;  %v204_v2 = vld [vmem:[%s607_s27] sm:$0xff]  ;;  %v209_v3 = vld [vmem:[%s607_s27 + $0x28] sm:$0xff] }
  0x10   : > { %524 = vmatmul.msk.f32.vlgmr.msra.gmra.mxu2 %vm223_vm0, %v214_v1  ;;  %514 = vmatmul.msk.f32.vlgmr.msra.gmra.mxu0 %vm223_vm0, %v204_v2  ;;  %v219_v4 = vld [vmem:[%s607_s27 + $0x78] sm:$0xff]  ;;  %v205_v6 = vld [vmem:[%s607_s27 + $0x8] sm:$0xff]  ;;  %v210_v7 = vld [vmem:[%s607_s27 + $0x30] sm:$0xff] }
  0x11   : > { %519 = vmatmul.msk.f32.vlgmr.msra.gmra.mxu1 %vm223_vm0, %v209_v3  ;;  %529 = vmatmul.msk.f32.vlgmr.msra.gmra.mxu3 %vm223_vm0, %v219_v4  ;;  %v215_v5 = vld [vmem:[%s607_s27 + $0x58] sm:$0xff]  ;;  %v220_v8 = vld [vmem:[%s607_s27 + $0x80] sm:$0xff]  ;;  %v206_v10 = vld [vmem:[%s607_s27 + $0x10] sm:$0xff] }
  0x12   : > { %v216_v9 = vld [vmem:[%s607_s27 + $0x60] sm:$0xff]  ;;  %v211_v11 = vld [vmem:[%s607_s27 + $0x38] sm:$0xff]  ;;  %v221_v12 = vld [vmem:[%s607_s27 + $0x88] sm:$0xff] }
  0x13   : > { %v217_v13 = vld [vmem:[%s607_s27 + $0x68] sm:$0xff]  ;;  %v207_v14 = vld [vmem:[%s607_s27 + $0x18] sm:$0xff]  ;;  %v212_v15 = vld [vmem:[%s607_s27 + $0x40] sm:$0xff] }
  0x14   : > { %v218_v16 = vld [vmem:[%s607_s27 + $0x70] sm:$0xff]  ;;  %v208_v17 = vld [vmem:[%s607_s27 + $0x20] sm:$0xff]  ;;  %v213_v18 = vld [vmem:[%s607_s27 + $0x48] sm:$0xff] }
  0x18   : > { %525 = vmatmul.msk.f32.gmra.mxu2 %vm223_vm0, %v215_v5  ;;  %515 = vmatmul.msk.f32.gmra.mxu0 %vm223_vm0, %v205_v6 }
  0x19   : > { %520 = vmatmul.msk.f32.gmra.mxu1 %vm223_vm0, %v210_v7  ;;  %530 = vmatmul.msk.f32.gmra.mxu3 %vm223_vm0, %v220_v8 }
  0x20   : > { %526 = vmatmul.msk.f32.gmra.mxu2 %vm223_vm0, %v216_v9  ;;  %516 = vmatmul.msk.f32.gmra.mxu0 %vm223_vm0, %v206_v10 }
  0x21   : > { %521 = vmatmul.msk.f32.gmra.mxu1 %vm223_vm0, %v211_v11  ;;  %531 = vmatmul.msk.f32.gmra.mxu3 %vm223_vm0, %v221_v12 }
  0x28   : > { %527 = vmatmul.msk.f32.gmra.mxu2 %vm223_vm0, %v217_v13  ;;  %517 = vmatmul.msk.f32.gmra.mxu0 %vm223_vm0, %v207_v14 }
  0x29   : > { %522 = vmatmul.msk.f32.gmra.mxu1 %vm223_vm0, %v212_v15 }
  0x30   : > { %528 = vmatmul.msk.f32.gmra.mxu2 %vm223_vm0, %v218_v16  ;;  %518 = vmatmul.msk.f32.gmra.mxu0 %vm223_vm0, %v208_v17 }
  0x31   : > { %523 = vmatmul.msk.f32.gmra.mxu1 %vm223_vm0, %v213_v18 }
  0x8d   : > { %v295_v21 = vpop.f32.mrf.mxu0 }
  0x8e   : > { %v353_v22 = vmul.f32 %v648_v19, %v295_v21  ;;  %v310_v23 = vpop.f32.mrf.mxu1 }
  0x8f   : > { %v358_v25 = vmul.f32 %v648_v19, %v310_v23 }
  0x90   : > { %v375_v26 = vadd.f32 %v653_v20, %v353_v22 }
  0x91   : > { %v380_v28 = vadd.f32 %v653_v20, %v358_v25 }
  0x92   : > { %v395_v29 = vmax.f32 %v656_v24, %v375_v26 }
  0x93   : > { %v400_v30 = vmax.f32 %v656_v24, %v380_v28  ;;  %v325_v31 = vpop.f32.mrf.mxu2 }
  0x94   : > { %v414_v32 = vmin.f32 %v660_v27, %v395_v29  ;;  %v363_v33 = vmul.f32 %v648_v19, %v325_v31  ;;  %v340_v36 = vpop.f32.mrf.mxu3 }
  0x95   : > { %v419_v34 = vmin.f32 %v660_v27, %v400_v30  ;;  %v298_v35 = vpop.f32.mrf.mxu0  ;;  %v368_v40 = vmul.f32 %v648_v19, %v340_v36 }
  0x96   : > { %433 = vst.msk [vmem:[%s669_s11] sm:$0xff] %vm432_vm1, %v414_v32  ;;  %v385_v37 = vadd.f32 %v653_v20, %v363_v33  ;;  %v354_v38 = vmul.f32 %v648_v19, %v298_v35  ;;  %v313_v39 = vpop.f32.mrf.mxu1 }
  0x97   : > { %438 = vst.msk [vmem:[%s669_s11 + $0x28] sm:$0xff] %vm432_vm1, %v419_v34  ;;  %v359_v41 = vmul.f32 %v648_v19, %v313_v39  ;;  %v390_v44 = vadd.f32 %v653_v20, %v368_v40 }
  0x98   : > { %v405_v42 = vmax.f32 %v656_v24, %v385_v37  ;;  %v376_v43 = vadd.f32 %v653_v20, %v354_v38 }
  0x99   : > { %v381_v45 = vadd.f32 %v653_v20, %v359_v41  ;;  %v410_v48 = vmax.f32 %v656_v24, %v390_v44 }
  0x9a   : > { %v424_v46 = vmin.f32 %v660_v27, %v405_v42  ;;  %v396_v47 = vmax.f32 %v656_v24, %v376_v43 }
  0x9b   : > { %v401_v49 = vmax.f32 %v656_v24, %v381_v45  ;;  %v328_v50 = vpop.f32.mrf.mxu2  ;;  %v429_v53 = vmin.f32 %v660_v27, %v410_v48 }
  0x9c   : > { %443 = vst.msk [vmem:[%s669_s11 + $0x50] sm:$0xff] %vm432_vm1, %v424_v46  ;;  %v415_v51 = vmin.f32 %v660_v27, %v396_v47  ;;  %v364_v52 = vmul.f32 %v648_v19, %v328_v50  ;;  %v343_v56 = vpop.f32.mrf.mxu3 }
  0x9d   : > { %v420_v54 = vmin.f32 %v660_v27, %v401_v49  ;;  %v301_v55 = vpop.f32.mrf.mxu0  ;;  %v369_v60 = vmul.f32 %v648_v19, %v343_v56  ;;  %448 = vst.msk [vmem:[%s669_s11 + $0x78] sm:$0xff] %vm432_vm1, %v429_v53 }
  0x9e   : > { %434 = vst.msk [vmem:[%s669_s11 + $0x8] sm:$0xff] %vm432_vm1, %v415_v51  ;;  %v386_v57 = vadd.f32 %v653_v20, %v364_v52  ;;  %v355_v58 = vmul.f32 %v648_v19, %v301_v55  ;;  %v316_v59 = vpop.f32.mrf.mxu1 }
  0x9f   : > { %439 = vst.msk [vmem:[%s669_s11 + $0x30] sm:$0xff] %vm432_vm1, %v420_v54  ;;  %v360_v61 = vmul.f32 %v648_v19, %v316_v59  ;;  %v391_v0 = vadd.f32 %v653_v20, %v369_v60 }
  0xa0   : > { %v406_v62 = vmax.f32 %v656_v24, %v386_v57  ;;  %v377_v63 = vadd.f32 %v653_v20, %v355_v58 }
  0xa1   : > { %v382_v1 = vadd.f32 %v653_v20, %v360_v61  ;;  %v411_v4 = vmax.f32 %v656_v24, %v391_v0 }
  0xa2   : > { %v425_v2 = vmin.f32 %v660_v27, %v406_v62  ;;  %v397_v3 = vmax.f32 %v656_v24, %v377_v63 }
  0xa3   : > { %v402_v5 = vmax.f32 %v656_v24, %v382_v1  ;;  %v331_v6 = vpop.f32.mrf.mxu2  ;;  %v430_v9 = vmin.f32 %v660_v27, %v411_v4 }
  0xa4   : > { %444 = vst.msk [vmem:[%s669_s11 + $0x58] sm:$0xff] %vm432_vm1, %v425_v2  ;;  %v416_v7 = vmin.f32 %v660_v27, %v397_v3  ;;  %v365_v8 = vmul.f32 %v648_v19, %v331_v6  ;;  %v346_v12 = vpop.f32.mrf.mxu3 }
  0xa5   : > { %v421_v10 = vmin.f32 %v660_v27, %v402_v5  ;;  %v304_v11 = vpop.f32.mrf.mxu0  ;;  %v370_v16 = vmul.f32 %v648_v19, %v346_v12  ;;  %449 = vst.msk [vmem:[%s669_s11 + $0x80] sm:$0xff] %vm432_vm1, %v430_v9 }
  0xa6   : > { %435 = vst.msk [vmem:[%s669_s11 + $0x10] sm:$0xff] %vm432_vm1, %v416_v7  ;;  %v387_v13 = vadd.f32 %v653_v20, %v365_v8  ;;  %v356_v14 = vmul.f32 %v648_v19, %v304_v11  ;;  %v319_v15 = vpop.f32.mrf.mxu1 }
  0xa7   : > { %440 = vst.msk [vmem:[%s669_s11 + $0x38] sm:$0xff] %vm432_vm1, %v421_v10  ;;  %v361_v17 = vmul.f32 %v648_v19, %v319_v15  ;;  %v392_v22 = vadd.f32 %v653_v20, %v370_v16 }
  0xa8   : > { %v407_v18 = vmax.f32 %v656_v24, %v387_v13  ;;  %v378_v21 = vadd.f32 %v653_v20, %v356_v14 }
  0xa9   : > { %v383_v23 = vadd.f32 %v653_v20, %v361_v17  ;;  %v412_v28 = vmax.f32 %v656_v24, %v392_v22 }
  0xaa   : > { %v426_v25 = vmin.f32 %v660_v27, %v407_v18  ;;  %v398_v26 = vmax.f32 %v656_v24, %v378_v21 }
  0xab   : > { %v403_v29 = vmax.f32 %v656_v24, %v383_v23  ;;  %v334_v30 = vpop.f32.mrf.mxu2  ;;  %v431_v33 = vmin.f32 %v660_v27, %v412_v28 }
  0xac   : > { %445 = vst.msk [vmem:[%s669_s11 + $0x60] sm:$0xff] %vm432_vm1, %v426_v25  ;;  %v417_v31 = vmin.f32 %v660_v27, %v398_v26  ;;  %v366_v32 = vmul.f32 %v648_v19, %v334_v30 }
  0xad   : > { %v422_v34 = vmin.f32 %v660_v27, %v403_v29  ;;  %v307_v35 = vpop.f32.mrf.mxu0  ;;  %450 = vst.msk [vmem:[%s669_s11 + $0x88] sm:$0xff] %vm432_vm1, %v431_v33 }
  0xae   : > { %436 = vst.msk [vmem:[%s669_s11 + $0x18] sm:$0xff] %vm432_vm1, %v417_v31  ;;  %v388_v36 = vadd.f32 %v653_v20, %v366_v32  ;;  %v357_v37 = vmul.f32 %v648_v19, %v307_v35  ;;  %v322_v38 = vpop.f32.mrf.mxu1 }
  0xaf   : > { %441 = vst.msk [vmem:[%s669_s11 + $0x40] sm:$0xff] %vm432_vm1, %v422_v34  ;;  %v362_v39 = vmul.f32 %v648_v19, %v322_v38 }
  0xb0   : > { %v408_v40 = vmax.f32 %v656_v24, %v388_v36  ;;  %v379_v41 = vadd.f32 %v653_v20, %v357_v37 }
  0xb1   : > { %v384_v42 = vadd.f32 %v653_v20, %v362_v39 }
  0xb2   : > { %v427_v43 = vmin.f32 %v660_v27, %v408_v40  ;;  %v399_v44 = vmax.f32 %v656_v24, %v379_v41 }
  0xb3   : > { %v404_v45 = vmax.f32 %v656_v24, %v384_v42  ;;  %v337_v46 = vpop.f32.mrf.mxu2 }
  0xb4   : > { %446 = vst.msk [vmem:[%s669_s11 + $0x68] sm:$0xff] %vm432_vm1, %v427_v43  ;;  %v418_v47 = vmin.f32 %v660_v27, %v399_v44  ;;  %v367_v48 = vmul.f32 %v648_v19, %v337_v46 }
  0xb5   : > { %v423_v49 = vmin.f32 %v660_v27, %v404_v45 }
  0xb6   : > { %437 = vst.msk [vmem:[%s669_s11 + $0x20] sm:$0xff] %vm432_vm1, %v418_v47  ;;  %v389_v50 = vadd.f32 %v653_v20, %v367_v48 }
  0xb7   : > { %442 = vst.msk [vmem:[%s669_s11 + $0x48] sm:$0xff] %vm432_vm1, %v423_v49 }
  0xb8   : > { %v409_v51 = vmax.f32 %v656_v24, %v389_v50 }
  0xba   : > { %v428_v52 = vmin.f32 %v660_v27, %v409_v51 }
  0xbc   : > { %447 = vst.msk [vmem:[%s669_s11 + $0x70] sm:$0xff] %vm432_vm1, %v428_v52 }
  0xbd PF: > { %s16_s20 = sadd.s32 1, %s553_s20  }
  0xbe   : > { %p13_p4 = scmp.ge.s32.totalorder %s16_s20, 4  }
  0xc0   :  { %15 = sbr.rel (!%p13_p4) target bundleno = 2 (0x2), region = 66 }

</bundles_post_ra>
